<compile_context>
chip_gen: v6e
topology: v6e:2x2x1
jax: 0.10.0
libtpu: 0.0.40
codegen_flags: <defaults>
</compile_context>

<pallas_src>
import jax
import jax.numpy as jnp
from jax.experimental import pallas as pl
from jax.experimental.pallas import tpu as pltpu


def net_kernel(xT_ref, w1t_ref, b1c_ref, w2c_ref, b2_ref, oT_ref):
    # xT_ref : (2, TB)  VMEM   x transposed, batch on lanes
    # w1t_ref: (32, 2)  VMEM   fc1 weight, PyTorch (out=32, in=2) layout
    # b1c_ref: (32, 1)  VMEM   fc1 bias as a column
    # w2c_ref: (32, 1)  VMEM   fc2 weight as a column
    # b2_ref : (1, 1)   SMEM   fc2 bias scalar
    # oT_ref : (2, TB)  VMEM   row 0 = e, row 1 = 1 - e
    xT = xT_ref[...]                       # (2, TB)
    w1t = w1t_ref[...]                     # (32, 2)

    # fc1 + relu on the VPU: K=2 contraction expanded as broadcast-FMA.
    # h is (32, TB) -- every vreg fully lane-dense.
    h = (w1t[:, 0:1] * xT[0:1, :]
         + w1t[:, 1:2] * xT[1:2, :]
         + b1c_ref[...])
    h = jnp.maximum(h, 0.0)                                        # (32, TB)

    # fc2: K=32 contraction as a sublane reduction over lane-dense vregs.
    t = jnp.sum(h * w2c_ref[...], axis=0, keepdims=True) + b2_ref[0, 0]  # (1, TB)

    # Analytic quantum expectation, concat fused into two lane-dense row
    # stores (no array constant captured, no lane-masked stores).
    e = 0.5 + 0.5 * jnp.sin(t)                                     # (1, TB)
    oT_ref[0:1, :] = e
    oT_ref[1:2, :] = 1.0 - e


def _round_up(n, m):
    return ((n + m - 1) // m) * m


def reference_forward(x, fc1_w, fc1_b, fc2_w, fc2_b):
    # Pure-jnp reference (also the small-batch fast path).
    h = jnp.maximum(x @ fc1_w.T + fc1_b, 0.0)
    z = h @ fc2_w.T + fc2_b
    e = 0.5 * (1.0 + jnp.sin(z))
    return jnp.concatenate([e, 1.0 - e], axis=-1)


def net_forward(x, fc1_w, fc1_b, fc2_w, fc2_b, *, tb=16384, small_b=1024,
                force_pallas=False):
    """x: (B, 2) f32.  PyTorch layouts: fc1_w (32, 2), fc1_b (32,),
    fc2_w (1, 32), fc2_b (1,).  Returns (B, 2)."""
    B = x.shape[0]

    # Tiny batches: one fused XLA op beats the pallas_call fixed overhead.
    if B <= small_b and not force_pallas:
        return reference_forward(x, fc1_w, fc1_b, fc2_w, fc2_b)

    # Batch-on-lanes layout: kernel sees x^T (2, TB) / out^T (2, TB).
    # TB is a multiple of 128; aim for >= 2 grid steps (v7x megacore) while
    # capping at `tb` so per-step HBM bytes amortize the grid-step overhead.
    TB = max(128, min(_round_up(tb, 128), _round_up(-(-B // 2), 128)))
    Bp = _round_up(B, TB)

    xT = x.astype(jnp.float32).T                     # (2, B)
    if Bp != B:
        # Padded columns compute relu(b1)·w2 + b2 on zero inputs; they are
        # sliced off below and never observed.
        xT = jnp.pad(xT, ((0, 0), (0, Bp - B)))

    # Pre-shape weights into sublane-aligned resident blocks (constant
    # index_map -> loaded once, kept in VMEM across the whole grid).
    w1t = fc1_w.astype(jnp.float32)                  # (32, 2)
    b1c = fc1_b.reshape(32, 1).astype(jnp.float32)   # (32, 1)
    w2c = fc2_w.reshape(32, 1).astype(jnp.float32)   # (32, 1)
    b2s = fc2_b.reshape(1, 1).astype(jnp.float32)    # (1, 1)  -> SMEM scalar

    outT = pl.pallas_call(
        net_kernel,
        grid=(Bp // TB,),
        out_shape=jax.ShapeDtypeStruct((2, Bp), jnp.float32),
        in_specs=[
            pl.BlockSpec((2, TB), lambda i: (0, i)),               # x^T tile
            pl.BlockSpec((32, 2), lambda i: (0, 0)),               # w1 (resident)
            pl.BlockSpec((32, 1), lambda i: (0, 0)),               # b1 (resident)
            pl.BlockSpec((32, 1), lambda i: (0, 0)),               # w2 (resident)
            pl.BlockSpec(memory_space=pltpu.MemorySpace.SMEM),     # b2 scalar
        ],
        out_specs=pl.BlockSpec((2, TB), lambda i: (0, i)),
        compiler_params=pltpu.CompilerParams(
            dimension_semantics=("parallel",),   # batch tiles independent
        ),
    )(xT, w1t, b1c, w2c, b2s)

    out = outT[:, :B].T                              # back to (B, 2)
    return out


def init_params(key):
    # PyTorch nn.Linear init layouts: fc1.weight (32, 2), fc1.bias (32,),
    # fc2.weight (1, 32), fc2.bias (1,).
    k1, k2, k3, k4 = jax.random.split(key, 4)
    bound1 = 1.0 / jnp.sqrt(2.0)
    bound2 = 1.0 / jnp.sqrt(32.0)
    fc1_w = jax.random.uniform(k1, (32, 2), jnp.float32, -bound1, bound1)
    fc1_b = jax.random.uniform(k2, (32,), jnp.float32, -bound1, bound1)
    fc2_w = jax.random.uniform(k3, (1, 32), jnp.float32, -bound2, bound2)
    fc2_b = jax.random.uniform(k4, (1,), jnp.float32, -bound2, bound2)
    return fc1_w, fc1_b, fc2_w, fc2_b


if __name__ == "__main__":
    key = jax.random.PRNGKey(0)
    kx1, kx2, kp = jax.random.split(key, 3)
    params = init_params(kp)

    # Small batch (module's typical use) -- force the Pallas path so the
    # kernel itself is exercised (single 128-lane block).
    B1 = 8
    x1 = jax.random.normal(kx1, (B1, 2), jnp.float32)
    out1 = jax.block_until_ready(net_forward(x1, *params, force_pallas=True))
    ref1 = reference_forward(x1, *params)
    assert out1.shape == (B1, 2)
    assert jnp.allclose(out1, ref1, atol=2e-5, rtol=1e-5), "mismatch (B=8, pallas)"

    # Moderate batch: 2-step "parallel" grid + lane-padding remainder path.
    B2 = 4100
    x2 = jax.random.normal(kx2, (B2, 2), jnp.float32)
    out2 = jax.block_until_ready(net_forward(x2, *params))
    ref2 = reference_forward(x2, *params)
    assert out2.shape == (B2, 2)
    assert jnp.allclose(out2, ref2, atol=2e-5, rtol=1e-5), "mismatch (B=4100)"

    # Tiny-batch fast path (pure XLA, skips pallas_call entirely).
    out_fast = jax.block_until_ready(net_forward(x1, *params))
    assert jnp.allclose(out_fast, ref1, atol=1e-6, rtol=1e-6), "mismatch (fast path)"

    print("KERNEL_OK")
</pallas_src>

<mosaic_0001>
module attributes {stable_mosaic.version = 11 : i64} {
  func.func @net_kernel(%arg0: i32, %arg1: memref<2x128xf32, #tpu.memory_space<vmem>>, %arg2: memref<32x2xf32, #tpu.memory_space<vmem>>, %arg3: memref<32x1xf32, #tpu.memory_space<vmem>>, %arg4: memref<32x1xf32, #tpu.memory_space<vmem>>, %arg5: memref<1x1xf32, #tpu.memory_space<smem>>, %arg6: memref<2x128xf32, #tpu.memory_space<vmem>>) attributes {dimension_semantics = [#tpu.dimension_semantics<parallel>], iteration_bounds = array<i64: 1>, scalar_prefetch = 0 : i64, scratch_operands = 0 : i64, tpu.core_type = #tpu.core_type<tc>, window_params = [{transform_indices = @transform_0, window_bounds = array<i64: 2, 128>}, {pipeline_mode = #tpu.pipeline_mode<synchronous>, transform_indices = @transform_1, window_bounds = array<i64: 32, 2>}, {pipeline_mode = #tpu.pipeline_mode<synchronous>, transform_indices = @transform_2, window_bounds = array<i64: 32, 1>}, {pipeline_mode = #tpu.pipeline_mode<synchronous>, transform_indices = @transform_3, window_bounds = array<i64: 32, 1>}, {transform_indices = @transform_4, window_bounds = array<i64: 1, 1>}, {transform_indices = @transform_5, window_bounds = array<i64: 2, 128>}]} {
    %c0 = arith.constant 0 : index
    %c0_0 = arith.constant 0 : index
    %0 = vector.load %arg1[%c0, %c0_0] : memref<2x128xf32, #tpu.memory_space<vmem>>, vector<2x128xf32>
    %c0_1 = arith.constant 0 : index
    %c0_2 = arith.constant 0 : index
    %1 = vector.load %arg2[%c0_1, %c0_2] : memref<32x2xf32, #tpu.memory_space<vmem>>, vector<32x2xf32>
    %2 = vector.extract_strided_slice %1 {offsets = [0, 0], sizes = [32, 1], strides = [1, 1]} : vector<32x2xf32> to vector<32x1xf32>
    %3 = vector.extract_strided_slice %0 {offsets = [0, 0], sizes = [1, 128], strides = [1, 1]} : vector<2x128xf32> to vector<1x128xf32>
    %4 = vector.broadcast %2 : vector<32x1xf32> to vector<32x128xf32>
    %5 = vector.broadcast %3 : vector<1x128xf32> to vector<32x128xf32>
    %6 = arith.mulf %4, %5 : vector<32x128xf32>
    %7 = vector.extract_strided_slice %1 {offsets = [0, 1], sizes = [32, 1], strides = [1, 1]} : vector<32x2xf32> to vector<32x1xf32>
    %8 = vector.extract_strided_slice %0 {offsets = [1, 0], sizes = [1, 128], strides = [1, 1]} : vector<2x128xf32> to vector<1x128xf32>
    %9 = vector.broadcast %7 : vector<32x1xf32> to vector<32x128xf32>
    %10 = vector.broadcast %8 : vector<1x128xf32> to vector<32x128xf32>
    %11 = arith.mulf %9, %10 : vector<32x128xf32>
    %12 = arith.addf %6, %11 : vector<32x128xf32>
    %c0_3 = arith.constant 0 : index
    %c0_4 = arith.constant 0 : index
    %13 = vector.load %arg3[%c0_3, %c0_4] : memref<32x1xf32, #tpu.memory_space<vmem>>, vector<32x1xf32>
    %14 = vector.broadcast %13 : vector<32x1xf32> to vector<32x128xf32>
    %15 = arith.addf %12, %14 : vector<32x128xf32>
    %cst = arith.constant 0.000000e+00 : f32
    %16 = vector.broadcast %cst : f32 to vector<32x128xf32>
    %17 = arith.maximumf %15, %16 : vector<32x128xf32>
    %c0_5 = arith.constant 0 : index
    %c0_6 = arith.constant 0 : index
    %18 = vector.load %arg4[%c0_5, %c0_6] : memref<32x1xf32, #tpu.memory_space<vmem>>, vector<32x1xf32>
    %19 = vector.broadcast %18 : vector<32x1xf32> to vector<32x128xf32>
    %20 = arith.mulf %17, %19 : vector<32x128xf32>
    %cst_7 = arith.constant dense<0.000000e+00> : vector<128xf32>
    %21 = vector.multi_reduction <add>, %20, %cst_7 [0] : vector<32x128xf32> to vector<128xf32>
    %22 = vector.shape_cast %21 : vector<128xf32> to vector<1x128xf32>
    %c0_8 = arith.constant 0 : index
    %c0_9 = arith.constant 0 : index
    %23 = memref.load %arg5[%c0_8, %c0_9] : memref<1x1xf32, #tpu.memory_space<smem>>
    %24 = vector.broadcast %23 : f32 to vector<1x128xf32>
    %25 = arith.addf %22, %24 : vector<1x128xf32>
    %26 = math.sin %25 : vector<1x128xf32>
    %cst_10 = arith.constant 5.000000e-01 : f32
    %27 = vector.broadcast %cst_10 : f32 to vector<1x128xf32>
    %28 = arith.mulf %27, %26 : vector<1x128xf32>
    %cst_11 = arith.constant 5.000000e-01 : f32
    %29 = vector.broadcast %cst_11 : f32 to vector<1x128xf32>
    %30 = arith.addf %29, %28 : vector<1x128xf32>
    %c0_12 = arith.constant 0 : index
    %c0_13 = arith.constant 0 : index
    %31 = vector.load %arg6[%c0_12, %c0_13] : memref<2x128xf32, #tpu.memory_space<vmem>>, vector<1x128xf32>
    tpu.vector_store %arg6[%c0_12, %c0_13], %30 {strides = array<i32>} : memref<2x128xf32, #tpu.memory_space<vmem>>, vector<1x128xf32>,
    %cst_14 = arith.constant 1.000000e+00 : f32
    %32 = vector.broadcast %cst_14 : f32 to vector<1x128xf32>
    %33 = arith.subf %32, %30 : vector<1x128xf32>
    %c1 = arith.constant 1 : index
    %c0_15 = arith.constant 0 : index
    %34 = vector.load %arg6[%c1, %c0_15] : memref<2x128xf32, #tpu.memory_space<vmem>>, vector<1x128xf32>
    tpu.vector_store %arg6[%c1, %c0_15], %33 {strides = array<i32>} : memref<2x128xf32, #tpu.memory_space<vmem>>, vector<1x128xf32>,
    return
  }
  func.func @transform_0(%arg0: i32) -> (i32, i32) {
    %c0_i32 = arith.constant 0 : i32
    %c0_i32_0 = arith.constant 0 : i32
    return %c0_i32, %arg0 : i32, i32
  }
  func.func @transform_1(%arg0: i32) -> (i32, i32) {
    %c0_i32 = arith.constant 0 : i32
    %c0_i32_0 = arith.constant 0 : i32
    %c0_i32_1 = arith.constant 0 : i32
    return %c0_i32, %c0_i32_0 : i32, i32
  }
  func.func @transform_2(%arg0: i32) -> (i32, i32) {
    %c0_i32 = arith.constant 0 : i32
    %c0_i32_0 = arith.constant 0 : i32
    %c0_i32_1 = arith.constant 0 : i32
    return %c0_i32, %c0_i32_0 : i32, i32
  }
  func.func @transform_3(%arg0: i32) -> (i32, i32) {
    %c0_i32 = arith.constant 0 : i32
    %c0_i32_0 = arith.constant 0 : i32
    %c0_i32_1 = arith.constant 0 : i32
    return %c0_i32, %c0_i32_0 : i32, i32
  }
  func.func @transform_4(%arg0: i32) -> (i32, i32) {
    %c0_i32 = arith.constant 0 : i32
    %c0_i32_0 = arith.constant 0 : i32
    %c0_i32_1 = arith.constant 0 : i32
    return %c0_i32, %c0_i32_0 : i32, i32
  }
  func.func @transform_5(%arg0: i32) -> (i32, i32) {
    %c0_i32 = arith.constant 0 : i32
    %c0_i32_0 = arith.constant 0 : i32
    return %c0_i32, %arg0 : i32, i32
  }
}

</mosaic_0001>

<bundles_post_ra>
// kernel: tpu_custom_call.1
= control target key start
LH: loop header
LB: loop body
LE: loop exit
PB: predicated region body
PF: predicated region fallthrough
CT: control target
= control target key end

     0   :  { %v324_v1 = vmov 1   ;;  %v325_v2 = vmov 0   ;;  %s429_s0 = inlined_call_operand.vmem [shape: f32[2,128], index: 0, kind: input, shape index: {}]   ;;  %s430_s1 = inlined_call_operand.vmem [shape: f32[32,2], index: 1, kind: input, shape index: {}]   ;;  %s431_s2 = inlined_call_operand.vmem [shape: f32[32,1], index: 2, kind: input, shape index: {}]   ;;  %s432_s3 = inlined_call_operand.vmem [shape: f32[32,1], index: 3, kind: input, shape index: {}]   ;;  %s433_s4 = inlined_call_operand.<no memory space> [shape: f32[1,1], index: 4, kind: input, shape index: {}]   ;;  %s434_s5 = inlined_call_operand.hbm [shape: f32[2,128], index: 5, kind: output, shape index: {}]  }
   0x1   :  { %v23_v0 = vld [vmem:[%s430_s1] sm:$0xff]  ;;  %296 = vset.pattern.permute.xlu1 %v324_v1  ;;  %295 = vset.pattern.permute.xlu0 %v325_v2  ;;  %v24_v3 = vld [vmem:[%s430_s1 + $0x8] sm:$0xff] }
   0x2   :  { %56 = vperm.xlu1 %296, %v23_v0   ;;  %29 = vperm.xlu0 %295, %v23_v0  }
   0x3   :  { %11 = vsyncpa [#allocation4], 0  ;;  %v25_v4 = vld [vmem:[%s430_s1 + $0x10] sm:$0xff]  ;;  %v26_v5 = vld [vmem:[%s430_s1 + $0x18] sm:$0xff]  ;;  %v47_v14 = vlaneseq }
   0x4   :  { %v83_v6 = vld [vmem:[%s431_s2] sm:$0xff]  ;;  %v84_v7 = vld [vmem:[%s431_s2 + $0x8] sm:$0xff]  ;;  %v85_v8 = vld [vmem:[%s431_s2 + $0x10] sm:$0xff] }
   0x5   :  { %v86_v9 = vld [vmem:[%s431_s2 + $0x18] sm:$0xff]  ;;  %v115_v10 = vld [vmem:[%s432_s3] sm:$0xff]  ;;  %v116_v11 = vld [vmem:[%s432_s3 + $0x8] sm:$0xff]  ;;  %v48_v17 = vshrl.u32 %v47_v14, 7 }
   0x6   :  { %60 = vperm.xlu1 %296, %v24_v3   ;;  %34 = vperm.xlu0 %295, %v24_v3   ;;  %v117_v12 = vld [vmem:[%s432_s3 + $0x10] sm:$0xff]  ;;  %v118_v13 = vld [vmem:[%s432_s3 + $0x18] sm:$0xff]  ;;  %v22_v22 = vld [vmem:[%s429_s0] sm:$0x3] }
   0x7   :  { %v73_v20 = vsub.s32 1, %v48_v17  ;;  %v49_v21 = vsub.s32 0, %v48_v17 }
   0x9   :  { %v74_v25 = vrot.slane %v22_v22, %v73_v20  ;;  %v50_v26 = vrot.slane %v22_v22, %v49_v21  ;;  %v327_v20 = vmov 2475754826  }
   0xa   :  { %64 = vperm.xlu1 %296, %v25_v4   ;;  %39 = vperm.xlu0 %295, %v25_v4  }
   0xe   :  { %68 = vperm.xlu1 %296, %v26_v5   ;;  %44 = vperm.xlu0 %295, %v26_v5   ;;  %v153_v5 = vstv %s433_s4  ;;  %s332_s4 = smov [#allocation3]  }
   0xf   :  { %s270_s17 = sshll.u32 %s332_s4, 4  ;;  %s271_s17 = int_to_ptr.vmem [resolvable:$true] %s270_s17 }
  0x10   :  { %s302_s18 = scalar_lea.vmem %s271_s17, 32  ;;  %p307_p1 = scmp.lt.s32.totalorder %s271_s17, %s271_s17 }
  0x11   :  { %p303_p0 = scmp.ne.s32.totalorder %s271_s17, %s302_s18  ;;  %p308_p2 = scmp.lt.s32.totalorder %s302_s18, %s302_s18 }
  0x12   :  { %297 = vset.pattern.permute.xlu1 %v325_v2  ;;  %89 = vperm.xlu0 %295, %v83_v6  }
  0x13   :  { %94 = vperm.xlu1 %297, %v84_v7   ;;  %p309_p3 = por %p308_p2, %p307_p1 }
  0x15   :  { %p310_p4 = pnand %p309_p3, %p303_p0 }
  0x16   :  { %99 = vperm.xlu0 %295, %v85_v8  }
  0x17   :  { %104 = vperm.xlu1 %297, %v86_v9  }
  0x1a   :  { %121 = vperm.xlu0 %295, %v115_v10  }
  0x1b   :  { %126 = vperm.xlu1 %297, %v116_v11  }
  0x1e   :  { %131 = vperm.xlu0 %295, %v117_v12  }
  0x1f   :  { %136 = vperm.xlu1 %297, %v118_v13  }
  0x7d   :  { %v57_v15 = vpop.permute.xlu1 %56  ;;  %v30_v16 = vpop.permute.xlu0 %29 }
  0x7e   :  { %v75_v29 = vmul.f32 %v74_v25, %v57_v15  ;;  %v51_v30 = vmul.f32 %v50_v26, %v30_v16 }
  0x80   :  { %v79_v36 = vadd.f32 %v75_v29, %v51_v30  ;;  %v330_v29 = vmov 920167782  }
  0x81   :  { %v61_v18 = vpop.permute.xlu1 %60  ;;  %v35_v19 = vpop.permute.xlu0 %34 }
  0x82   :  { %v76_v31 = vmul.f32 %v74_v25, %v61_v18  ;;  %v52_v32 = vmul.f32 %v50_v26, %v35_v19  ;;  %v326_v18 = vmov 683565275  }
  0x84   :  { %v80_v40 = vadd.f32 %v76_v31, %v52_v32  ;;  %v331_v32 = vmov 1326507024  }
  0x85   :  { %v65_v23 = vpop.permute.xlu1 %64  ;;  %v40_v24 = vpop.permute.xlu0 %39 }
  0x86   :  { %v77_v34 = vmul.f32 %v74_v25, %v65_v23  ;;  %v53_v35 = vmul.f32 %v50_v26, %v40_v24  ;;  %v328_v23 = vmov 2131351028  }
  0x88   :  { %v81_v44 = vadd.f32 %v77_v34, %v53_v35 }
  0x89   :  { %v69_v27 = vpop.permute.xlu1 %68  ;;  %v45_v28 = vpop.permute.xlu0 %44 }
  0x8a   :  { %v78_v38 = vmul.f32 %v74_v25, %v69_v27  ;;  %v54_v39 = vmul.f32 %v50_v26, %v45_v28  ;;  %v329_v26 = vmov 2102212464  }
  0x8c   :  { %v82_v46 = vadd.f32 %v78_v38, %v54_v39 }
  0x8d   :  { %v90_v33 = vpop.permute.xlu0 %89 }
  0x8e   :  { %v95_v37 = vpop.permute.xlu1 %94  ;;  %v107_v41 = vadd.f32 %v90_v33, %v79_v36 }
  0x8f   :  { %v108_v42 = vadd.f32 %v95_v37, %v80_v40 }
  0x90   :  { %v111_v47 = vmax.f32 %v107_v41, 0.0 }
  0x91   :  { %v100_v43 = vpop.permute.xlu0 %99  ;;  %v112_v49 = vmax.f32 %v108_v42, 0.0 }
  0x92   :  { %v105_v45 = vpop.permute.xlu1 %104  ;;  %v109_v48 = vadd.f32 %v100_v43, %v81_v44 }
  0x93   :  { %v110_v50 = vadd.f32 %v105_v45, %v82_v46 }
  0x94   :  { %v113_v55 = vmax.f32 %v109_v48, 0.0 }
  0x95   :  { %v122_v51 = vpop.permute.xlu0 %121  ;;  %v114_v56 = vmax.f32 %v110_v50, 0.0 }
  0x96   :  { %v139_v52 = vmul.f32 %v122_v51, %v111_v47  ;;  %v127_v53 = vpop.permute.xlu1 %126 }
  0x97   :  { %v140_v54 = vmul.f32 %v127_v53, %v112_v49 }
  0x99   :  { %v143_v57 = vadd.f32 %v140_v54, %v139_v52  ;;  %v132_v58 = vpop.permute.xlu0 %131 }
  0x9a   :  { %v141_v59 = vmul.f32 %v132_v58, %v113_v55  ;;  %v137_v60 = vpop.permute.xlu1 %136 }
  0x9b   :  { %v142_v61 = vmul.f32 %v137_v60, %v114_v56 }
  0x9c   :  { %v144_v62 = vadd.f32 %v143_v57, %v141_v59 }
  0x9e   :  { %v145_v63 = vadd.f32 %v144_v62, %v142_v61 }
  0xa0   :  { %v146_v0 = vrot.slane %v145_v63, 4 }
  0xa2   :  { %v147_v1 = vadd.f32 %v146_v0, %v145_v63 }
  0xa4   :  { %v148_v2 = vrot.slane %v147_v1, 2 }
  0xa6   :  { %v149_v3 = vadd.f32 %v148_v2, %v147_v1 }
  0xa8   :  { %v150_v4 = vrot.slane %v149_v3, 1 }
  0xaa   :  { %v151_v6 = vadd.f32 %v150_v4, %v149_v3 }
  0xac   :  { %v405_v7 = vadd.f32 %v153_v5, %v151_v6 }
  0xae   :  { %v158_v8 = vand.u32 2139095040, %v405_v7  ;;  %v155_v12 = vand.u32 2147483647, %v405_v7  ;;  %vm157_vm7 = vcmp.lt.s32.totalorder %v405_v7, 0  ;;  %vm247_vm12 = vweird.f32 %v405_v7 }
  0xb0   :  { %v159_v9 = vshrl.u32 %v158_v8, 23  ;;  %v162_v16 = vand.u32 8388607, %v155_v12  ;;  %vm156_vm8 = vcmp.le.f32.partialorder %v155_v12, 0.7853982 }
  0xb2   :  { %v278_v10 = vadd.s32 4294967169, %v159_v9  ;;  %v163_v34 = vor.u32 8388608, %v162_v16 }
  0xb4   :  { %v165_v11 = vadd.s32 1, %v278_v10  ;;  %v203_v48 = vshll.u32 %v163_v34, 8 }
  0xb6   :  { %vm166_vm0 = vcmp.gt.s32.totalorder %v165_v11, 0 }
  0xb7   :  { %v167_v13 = vsel %vm166_vm0, %v165_v11, 0 }
  0xb8   :  { %v169_v14 = vand.u32 31, %v167_v13  ;;  %v168_v17 = vshrl.u32 %v167_v13, 5 }
  0xba   :  { %v170_v15 = vsub.s32 32, %v169_v14  ;;  %v172_v19 = vshll.u32 %v326_v18, %v169_v14  ;;  %v175_v21 = vshll.u32 %v327_v20, %v169_v14  ;;  %v178_v25 = vshll.u32 %v328_v23, %v169_v14 }
  0xbb   :  { %v181_v28 = vshll.u32 %v329_v26, %v169_v14  ;;  %v184_v31 = vshll.u32 %v330_v29, %v169_v14  ;;  %vm187_vm1 = vcmp.lt.s32.totalorder %v168_v17, 1  ;;  %vm190_vm2 = vcmp.lt.s32.totalorder %v168_v17, 4 }
  0xbc   :  { %v173_v22 = vshrl.u32 %v327_v20, %v170_v15  ;;  %v176_v24 = vshrl.u32 %v328_v23, %v170_v15  ;;  %v179_v27 = vshrl.u32 %v329_v26, %v170_v15  ;;  %v182_v30 = vshrl.u32 %v330_v29, %v170_v15 }
  0xbd   :  { %v185_v33 = vshrl.u32 %v331_v32, %v170_v15  ;;  %v171_v43 = vshrl.u32 %v326_v18, %v170_v15  ;;  %vm189_vm3 = vcmp.lt.s32.totalorder %v168_v17, 3  ;;  %vm188_vm4 = vcmp.lt.s32.totalorder %v168_v17, 2 }
  0xbe   :  { %v174_v35 = vor.u32 %v173_v22, %v172_v19  ;;  %v177_v36 = vor.u32 %v176_v24, %v175_v21  ;;  %v180_v37 = vor.u32 %v179_v27, %v178_v25  ;;  %v183_v38 = vor.u32 %v182_v30, %v181_v28 }
  0xbf   :  { %v186_v39 = vor.u32 %v185_v33, %v184_v31 }
  0xc0   :  { %v192_v40 = vsel %vm190_vm2, %v180_v37, 2102212464  ;;  %v195_v41 = vsel %vm187_vm1, %v174_v35, %v177_v36  ;;  %v199_v42 = vsel %vm187_vm1, %v177_v36, %v180_v37  ;;  %v196_v44 = vsel %vm190_vm2, %v183_v38, 920167782 }
  0xc1   :  { %v200_v45 = vsel %vm190_vm2, %v186_v39, 1326507024  ;;  %v197_v46 = vsel %vm189_vm3, %v180_v37, %v196_v44  ;;  %v191_v49 = vsel %vm187_vm1, %v171_v43, %v174_v35  ;;  %v193_v50 = vsel %vm189_vm3, %v177_v36, %v192_v40 }
  0xc2   :  { %v201_v47 = vsel %vm189_vm3, %v183_v38, %v200_v45  ;;  %v198_v51 = vsel %vm188_vm4, %v195_v41, %v197_v46  ;;  %v194_v57 = vsel %vm188_vm4, %v191_v49, %v193_v50 }
  0xc3   :  { %v202_v52 = vsel %vm188_vm4, %v199_v42, %v201_v47  ;;  %v414_v55 = vmul.u32.u64.low %v203_v48, %v198_v51  ;;  %v415_v56 = vmul.u32.u64.high %v203_v48, %v198_v51, %v414_v55  ;;  %v210_v59 = vmul.u32 %v203_v48, %v194_v57 }
  0xc4   :  { %v411_v53 = vmul.u32.u64.low %v203_v48, %v202_v52  ;;  %v412_v54 = vmul.u32.u64.high %v203_v48, %v202_v52, %v411_v53 }
  0xc5   :  { %v213_v58 = vadd.s32 1, %v415_v56 }
  0xc6   :  { %vm212_vm5 = vc.u32 %v412_v54, %v414_v55  ;;  %v211_v8 = vadd.s32 %v414_v55, %v412_v54 }
  0xc7   :  { %v214_v60 = vsel %vm212_vm5, %v213_v58, %v415_v56 }
  0xc8   :  { %v215_v61 = vadd.s32 %v214_v60, %v210_v59 }
  0xca   :  { %v216_v62 = vadd.s32 536870912, %v215_v61 }
  0xcc   :  { %v217_v63 = vshrl.u32 %v216_v62, 30 }
  0xce   :  { %v218_v0 = vshll.u32 %v217_v63, 30  ;;  %v241_v22 = vsub.s32 4, %v217_v63 }
  0xd0   :  { %v219_v1 = vsub.s32 %v215_v61, %v218_v0  ;;  %v242_v25 = vsel %vm157_vm7, %v241_v22, %v217_v63 }
  0xd1   :  { %v244_v26 = vsel %vm156_vm8, 0, %v242_v25 }
  0xd2   :  { %v221_v2 = vsub.s32 0, %v219_v1  ;;  %v248_v27 = vadd.s32 3, %v244_v26 }
  0xd4   :  { %v279_v3 = vmin.u32 %v221_v2, %v219_v1  ;;  %v249_v28 = vand.u32 3, %v248_v27 }
  0xd6   :  { %v223_v4 = vclz %v279_v3  ;;  %vm254_vm9 = vcmp.eq.s32.totalorder %v249_v28, 2  ;;  %vm251_vm10 = vcmp.eq.s32.totalorder %v249_v28, 0  ;;  %vm250_vm11 = vcmp.lt.s32.totalorder %v249_v28, 2 }
  0xd8   :  { %v280_v5 = vadd.s32 4294967294, %v223_v4 }
  0xda   :  { %vm281_vm6 = vcmp.lt.s32.totalorder %v280_v5, 0 }
  0xdb   :  { %v226_v6 = vsel %vm281_vm6, 0, %v280_v5 }
  0xdc   :  { %v227_v9 = vsub.s32 32, %v226_v6  ;;  %v231_v10 = vsub.s32 4294967266, %v226_v6  ;;  %v228_v11 = vshll.u32 %v219_v1, %v226_v6 }
  0xde   :  { %v229_v13 = vshrl.u32 %v211_v8, %v227_v9  ;;  %v232_v14 = vadd.s32 127, %v231_v10 }
  0xe0   :  { %v230_v15 = vor.u32 %v229_v13, %v228_v11  ;;  %v233_v16 = vshll.u32 %v232_v14, 23 }
  0xe2   :  { %v234_v17 = vor.u32 4788187, %v233_v16  ;;  %v237_v19 = vcvt.s32.f32 %v230_v15 }
  0xe4   :  { %v235_v18 = vand.u32 2147483647, %v234_v17 }
  0xe6   :  { %v238_v20 = vmul.f32 %v237_v19, %v235_v18 }
  0xe8   :  { %v239_v21 = vxor.u32 2147483648, %v238_v20 }
  0xea   :  { %v240_v23 = vsel %vm157_vm7, %v239_v21, %v238_v20 }
  0xeb   :  { %v243_v24 = vsel %vm156_vm8, %v405_v7, %v240_v23 }
  0xec   :  { %298 = vcosq.f32 %v243_v24 }
  0xed   :  { %300 = vsinq.f32 %v243_v24 }
  0xf9   :  { %v299_v29 = vpop.eup %298 }
  0xfa   :  { %v301_v30 = vpop.eup %300  ;;  %v255_v31 = vxor.u32 2147483648, %v299_v29 }
  0xfb   :  { %v252_v32 = vxor.u32 2147483648, %v301_v30 }
  0xfc   :  { %v256_v33 = vsel %vm254_vm9, %v255_v31, %v301_v30 }
  0xfd   :  { %v253_v34 = vsel %vm251_vm10, %v299_v29, %v252_v32 }
  0xfe   :  { %v257_v12 = vsel %vm250_vm11, %v253_v34, %v256_v33 }
  0xff   :  { %v258_v35 = vsel %vm247_vm12, nan, %v257_v12 }
 0x100   :  { %v259_v36 = vmul.f32 0.5, %v258_v35 }
 0x102   :  { %v260_v37 = vadd.f32 0.5, %v259_v36 }
 0x104   :  { %261 = vst [vmem:[#allocation3] sm:$0x1] %v260_v37  ;;  %v262_v38 = vsub.f32 1.0, %v260_v37 }
 0x106   :  { %263 = vst [vmem:[#allocation3 + $0x1] sm:$0x1] %v262_v38 }
 0x107   :  { %313 = shalt.err (!%p310_p4)
}
 0x108   :  { %273 = dma.vmem_to_hbm [thread:$0]  %s271_s17, 32, %s434_s5, [#allocation4]  }
 0x109   :  { %322 = dma.done.wait [#allocation4], 32  }
 0x10a   :  { %323 = vsyncadd [#allocation4], 4294967264 }
 0x10b   :  { %277 = vsyncpa [#allocation4], 1 }

</bundles_post_ra>
